<compile_context>
chip_gen: v6e
topology: v6e:2x2x1
jax: 0.10.0
libtpu: 0.0.40
codegen_flags: <defaults>
</compile_context>

<pallas_src>
import math

import jax
import jax.numpy as jnp
from jax import lax
from jax.experimental import pallas as pl
from jax.experimental.pallas import tpu as pltpu


def _round_up(n: int, m: int) -> int:
    return ((n + m - 1) // m) * m


def _pick_tile(B: int, block_rows: int) -> int:
    """Batch tile size.

    - B <= 128: a single tile rounded up to a sublane multiple (splitting a
      tiny batch only adds per-step overhead and would break the lane-dense
      output constraint).
    - B  > 128: a multiple of 128 (so the (1, bs) output blocks store
      unmasked), capped at block_rows, and never larger than ~B/2 so the grid
      has >= 2 steps and both v7x TensorCores get work.
    """
    if B <= 128:
        return _round_up(max(B, 1), 8)
    return max(128, min(block_rows, _round_up(pl.cdiv(B, 2), 128)))


def _mlp_kernel(x_ref, w1_ref, b1_ref, w2_ref, b2_ref, w3_ref, b3_ref, o_ref):
    # Layer 1: (bs, dim) @ (dim, 128), f32 accumulation on the MXU.
    # x is streamed as f32 and cast to the weight dtype (bf16 when enabled)
    # in-register — no extra HBM traffic for the cast or the unaligned dim.
    x_t = x_ref[...].astype(w1_ref.dtype)
    h1 = jnp.dot(x_t, w1_ref[...], preferred_element_type=jnp.float32)
    h1 = jnp.maximum(h1 + b1_ref[...], 0.0)                       # f32 VPU

    # Layer 2: (bs, 128) @ (128, 128), f32 accumulation.
    h2 = jnp.dot(h1.astype(w2_ref.dtype), w2_ref[...],
                 preferred_element_type=jnp.float32)
    h2 = jnp.maximum(h2 + b2_ref[...], 0.0)                       # f32 VPU

    # Layer 3: 128 -> 1 as an M=1 matmul (1,128) x (bs,128)^T so the per-step
    # result is a lane-dense (1, bs) row (dense output stores / DMA).
    row = lax.dot_general(
        w3_ref[...], h2,
        dimension_numbers=(((1,), (1,)), ((), ())),
        preferred_element_type=jnp.float32)
    o_ref[...] = (row + b3_ref[0]).astype(o_ref.dtype)


def approximator_forward(x, params, *, block_rows: int = 512,
                         use_bf16: bool = True):
    """x: (B, dim) float32.  params: dict of w1,b1,w2,b2,w3,b3.

    w1: (dim, 128)  b1: (1, 128)
    w2: (128, 128)  b2: (1, 128)
    w3: (1, 128)    b3: (1,)        (final layer as a row + scalar bias)

    use_bf16: store w1/w2 and feed the matmuls in bf16 (f32 accumulation).
    Set False for an exact-f32 match of the torch module.
    """
    B, dim = x.shape
    w1, b1 = params["w1"], params["b1"]
    w2, b2 = params["w2"], params["b2"]
    w3, b3 = params["w3"], params["b3"]

    bs = _pick_tile(B, block_rows)
    num_tiles = pl.cdiv(B, bs)          # ragged last tile is fine (rows are
    n_total = num_tiles * bs            # independent; garbage rows sliced off)

    w_dtype = jnp.bfloat16 if use_bf16 else jnp.float32
    w1c = w1.astype(w_dtype)            # tiny, one-time, VMEM-resident
    w2c = w2.astype(w_dtype)

    out = pl.pallas_call(
        _mlp_kernel,
        out_shape=jax.ShapeDtypeStruct((1, n_total), jnp.float32),
        grid=(num_tiles,),
        in_specs=[
            pl.BlockSpec((bs, dim), lambda i: (i, 0)),        # x: streamed
            pl.BlockSpec((dim, 128), lambda i: (0, 0)),       # w1: resident
            pl.BlockSpec((1, 128), lambda i: (0, 0)),         # b1: resident
            pl.BlockSpec((128, 128), lambda i: (0, 0)),       # w2: resident
            pl.BlockSpec((1, 128), lambda i: (0, 0)),         # b2: resident
            pl.BlockSpec((1, 128), lambda i: (0, 0)),         # w3: resident
            pl.BlockSpec(memory_space=pltpu.MemorySpace.SMEM),  # b3 scalar
        ],
        out_specs=pl.BlockSpec((1, bs), lambda i: (0, i)),    # lane-dense row
        compiler_params=pltpu.CompilerParams(
            dimension_semantics=("parallel",),   # megacore sharding on v7x
        ),
    )(x.astype(jnp.float32), w1c, b1, w2, b2, w3, b3)

    return out.reshape(-1, 1)[:B]


def init_params(dim: int, key):
    """Deterministic init mimicking torch.nn.Linear (uniform +-1/sqrt(fan_in)).

    Weights stored as [in, out] (transpose of torch). w3 is kept as a (1, 128)
    row and b3 as a (1,) scalar so the kernel can do the last layer lane-dense.
    """
    keys = jax.random.split(key, 6)

    def linear(kw, kb, fan_in, fan_out):
        bound = 1.0 / math.sqrt(fan_in)
        w = jax.random.uniform(kw, (fan_in, fan_out), jnp.float32, -bound, bound)
        b = jax.random.uniform(kb, (1, fan_out), jnp.float32, -bound, bound)
        return w, b

    w1, b1 = linear(keys[0], keys[1], dim, 128)
    w2, b2 = linear(keys[2], keys[3], 128, 128)
    w3, b3 = linear(keys[4], keys[5], 128, 1)
    return {
        "w1": w1, "b1": b1,
        "w2": w2, "b2": b2,
        "w3": w3.T,                 # (1, 128) row
        "b3": b3.reshape(1),        # (1,) scalar for SMEM
    }


def _reference(x, params):
    hp = lax.Precision.HIGHEST
    h1 = jnp.maximum(jnp.dot(x, params["w1"], precision=hp) + params["b1"], 0.0)
    h2 = jnp.maximum(jnp.dot(h1, params["w2"], precision=hp) + params["b2"], 0.0)
    return jnp.dot(h2, params["w3"].T, precision=hp) + params["b3"]


if __name__ == "__main__":
    dim = 100          # default `dim` of Approximator
    key = jax.random.PRNGKey(0)
    kx1, kx2, kp = jax.random.split(key, 3)
    params = init_params(dim, kp)

    fwd_f32 = jax.jit(lambda xx, pp: approximator_forward(xx, pp, use_bf16=False))
    fwd_bf16 = jax.jit(lambda xx, pp: approximator_forward(xx, pp, use_bf16=True))

    # Small batch (single grid step).
    x_small = jax.random.normal(kx1, (8, dim), jnp.float32)
    ref_small = _reference(x_small, params)
    out_small = jax.block_until_ready(fwd_f32(x_small, params))
    assert out_small.shape == (8, 1)
    assert jnp.allclose(out_small, ref_small, atol=2e-4, rtol=2e-4), "f32 small mismatch"
    out_small_bf = jax.block_until_ready(fwd_bf16(x_small, params))
    assert jnp.allclose(out_small_bf, ref_small, atol=3e-2, rtol=3e-2), "bf16 small mismatch"

    # Non-divisible batch (exercises multi-tile grid + ragged last block).
    x_big = jax.random.normal(kx2, (300, dim), jnp.float32)
    ref_big = _reference(x_big, params)
    out_big = jax.block_until_ready(fwd_f32(x_big, params))
    assert out_big.shape == (300, 1)
    assert jnp.allclose(out_big, ref_big, atol=2e-4, rtol=2e-4), "f32 big mismatch"
    out_big_bf = jax.block_until_ready(fwd_bf16(x_big, params))
    assert out_big_bf.shape == (300, 1)
    assert jnp.allclose(out_big_bf, ref_big, atol=3e-2, rtol=3e-2), "bf16 big mismatch"

    print("KERNEL_OK")
</pallas_src>

<mosaic_0001>
module attributes {stable_mosaic.version = 11 : i64} {
  func.func @_mlp_kernel(%arg0: i32, %arg1: memref<8x100xf32, #tpu.memory_space<vmem>>, %arg2: memref<100x128xf32, #tpu.memory_space<vmem>>, %arg3: memref<1x128xf32, #tpu.memory_space<vmem>>, %arg4: memref<128x128xf32, #tpu.memory_space<vmem>>, %arg5: memref<1x128xf32, #tpu.memory_space<vmem>>, %arg6: memref<1x128xf32, #tpu.memory_space<vmem>>, %arg7: memref<1xf32, #tpu.memory_space<smem>>, %arg8: memref<1x8xf32, #tpu.memory_space<vmem>>) attributes {dimension_semantics = [#tpu.dimension_semantics<parallel>], iteration_bounds = array<i64: 1>, scalar_prefetch = 0 : i64, scratch_operands = 0 : i64, tpu.core_type = #tpu.core_type<tc>, window_params = [{transform_indices = @transform_0, window_bounds = array<i64: 8, 100>}, {pipeline_mode = #tpu.pipeline_mode<synchronous>, transform_indices = @transform_1, window_bounds = array<i64: 100, 128>}, {pipeline_mode = #tpu.pipeline_mode<synchronous>, transform_indices = @transform_2, window_bounds = array<i64: 1, 128>}, {pipeline_mode = #tpu.pipeline_mode<synchronous>, transform_indices = @transform_3, window_bounds = array<i64: 128, 128>}, {pipeline_mode = #tpu.pipeline_mode<synchronous>, transform_indices = @transform_4, window_bounds = array<i64: 1, 128>}, {pipeline_mode = #tpu.pipeline_mode<synchronous>, transform_indices = @transform_5, window_bounds = array<i64: 1, 128>}, {transform_indices = @transform_6, window_bounds = array<i64: 1>}, {transform_indices = @transform_7, window_bounds = array<i64: 1, 8>}]} {
    %c0 = arith.constant 0 : index
    %c0_0 = arith.constant 0 : index
    %0 = vector.load %arg1[%c0, %c0_0] : memref<8x100xf32, #tpu.memory_space<vmem>>, vector<8x100xf32>
    %c0_1 = arith.constant 0 : index
    %c0_2 = arith.constant 0 : index
    %1 = vector.load %arg2[%c0_1, %c0_2] : memref<100x128xf32, #tpu.memory_space<vmem>>, vector<100x128xf32>
    %cst = arith.constant dense<0.000000e+00> : vector<8x128xf32>
    %2 = tpu.matmul %0, %1, %cst {dimension_numbers = #tpu.dot_dimension_numbers<[1], [0], [0], [1], [0, 0, 1, 1], [], []>} : vector<8x100xf32>, vector<100x128xf32>, vector<8x128xf32> -> vector<8x128xf32>
    %c0_3 = arith.constant 0 : index
    %c0_4 = arith.constant 0 : index
    %3 = vector.load %arg3[%c0_3, %c0_4] : memref<1x128xf32, #tpu.memory_space<vmem>>, vector<1x128xf32>
    %4 = vector.broadcast %3 : vector<1x128xf32> to vector<8x128xf32>
    %5 = arith.addf %2, %4 : vector<8x128xf32>
    %cst_5 = arith.constant 0.000000e+00 : f32
    %6 = vector.broadcast %cst_5 : f32 to vector<8x128xf32>
    %7 = arith.maximumf %5, %6 : vector<8x128xf32>
    %c0_6 = arith.constant 0 : index
    %c0_7 = arith.constant 0 : index
    %8 = vector.load %arg4[%c0_6, %c0_7] : memref<128x128xf32, #tpu.memory_space<vmem>>, vector<128x128xf32>
    %cst_8 = arith.constant dense<0.000000e+00> : vector<8x128xf32>
    %9 = tpu.matmul %7, %8, %cst_8 {dimension_numbers = #tpu.dot_dimension_numbers<[1], [0], [0], [1], [0, 0, 1, 1], [], []>} : vector<8x128xf32>, vector<128x128xf32>, vector<8x128xf32> -> vector<8x128xf32>
    %c0_9 = arith.constant 0 : index
    %c0_10 = arith.constant 0 : index
    %10 = vector.load %arg5[%c0_9, %c0_10] : memref<1x128xf32, #tpu.memory_space<vmem>>, vector<1x128xf32>
    %11 = vector.broadcast %10 : vector<1x128xf32> to vector<8x128xf32>
    %12 = arith.addf %9, %11 : vector<8x128xf32>
    %cst_11 = arith.constant 0.000000e+00 : f32
    %13 = vector.broadcast %cst_11 : f32 to vector<8x128xf32>
    %14 = arith.maximumf %12, %13 : vector<8x128xf32>
    %c0_12 = arith.constant 0 : index
    %c0_13 = arith.constant 0 : index
    %15 = vector.load %arg6[%c0_12, %c0_13] : memref<1x128xf32, #tpu.memory_space<vmem>>, vector<1x128xf32>
    %cst_14 = arith.constant dense<0.000000e+00> : vector<1x8xf32>
    %16 = tpu.matmul %15, %14, %cst_14 {dimension_numbers = #tpu.dot_dimension_numbers<[1], [1], [0], [0], [0, 0, 1, 0], [], []>} : vector<1x128xf32>, vector<8x128xf32>, vector<1x8xf32> -> vector<1x8xf32>
    %c0_15 = arith.constant 0 : index
    %17 = memref.load %arg7[%c0_15] : memref<1xf32, #tpu.memory_space<smem>>
    %18 = vector.broadcast %17 : f32 to vector<1x8xf32>
    %19 = arith.addf %16, %18 : vector<1x8xf32>
    %c0_16 = arith.constant 0 : index
    %c0_17 = arith.constant 0 : index
    %20 = vector.load %arg8[%c0_16, %c0_17] : memref<1x8xf32, #tpu.memory_space<vmem>>, vector<1x8xf32>
    tpu.vector_store %arg8[%c0_16, %c0_17], %19 {strides = array<i32>} : memref<1x8xf32, #tpu.memory_space<vmem>>, vector<1x8xf32>,
    return
  }
  func.func @transform_0(%arg0: i32) -> (i32, i32) {
    %c0_i32 = arith.constant 0 : i32
    %c0_i32_0 = arith.constant 0 : i32
    return %arg0, %c0_i32 : i32, i32
  }
  func.func @transform_1(%arg0: i32) -> (i32, i32) {
    %c0_i32 = arith.constant 0 : i32
    %c0_i32_0 = arith.constant 0 : i32
    %c0_i32_1 = arith.constant 0 : i32
    return %c0_i32, %c0_i32_0 : i32, i32
  }
  func.func @transform_2(%arg0: i32) -> (i32, i32) {
    %c0_i32 = arith.constant 0 : i32
    %c0_i32_0 = arith.constant 0 : i32
    %c0_i32_1 = arith.constant 0 : i32
    return %c0_i32, %c0_i32_0 : i32, i32
  }
  func.func @transform_3(%arg0: i32) -> (i32, i32) {
    %c0_i32 = arith.constant 0 : i32
    %c0_i32_0 = arith.constant 0 : i32
    %c0_i32_1 = arith.constant 0 : i32
    return %c0_i32, %c0_i32_0 : i32, i32
  }
  func.func @transform_4(%arg0: i32) -> (i32, i32) {
    %c0_i32 = arith.constant 0 : i32
    %c0_i32_0 = arith.constant 0 : i32
    %c0_i32_1 = arith.constant 0 : i32
    return %c0_i32, %c0_i32_0 : i32, i32
  }
  func.func @transform_5(%arg0: i32) -> (i32, i32) {
    %c0_i32 = arith.constant 0 : i32
    %c0_i32_0 = arith.constant 0 : i32
    %c0_i32_1 = arith.constant 0 : i32
    return %c0_i32, %c0_i32_0 : i32, i32
  }
  func.func @transform_6(%arg0: i32) -> i32 {
    %c0_i32 = arith.constant 0 : i32
    %c0_i32_0 = arith.constant 0 : i32
    return %c0_i32 : i32
  }
  func.func @transform_7(%arg0: i32) -> (i32, i32) {
    %c0_i32 = arith.constant 0 : i32
    %c0_i32_0 = arith.constant 0 : i32
    return %c0_i32, %arg0 : i32, i32
  }
}

</mosaic_0001>

<bundles_post_ra>
// kernel: _lambda_.1
= control target key start
LH: loop header
LB: loop body
LE: loop exit
PB: predicated region body
PF: predicated region fallthrough
CT: control target
= control target key end

     0   :  { %13 = vsyncpa [#allocation4], 0  ;;  %s660_s0 = inlined_call_operand.hbm [shape: f32[8,100], index: 0, kind: input, shape index: {}]   ;;  %s661_s1 = inlined_call_operand.hbm [shape: f32[100,128], index: 1, kind: input, shape index: {}]   ;;  %s662_s2 = inlined_call_operand.vmem [shape: f32[1,128], index: 2, kind: input, shape index: {}]   ;;  %s663_s3 = inlined_call_operand.hbm [shape: f32[128,128], index: 3, kind: input, shape index: {}]   ;;  %s664_s4 = inlined_call_operand.vmem [shape: f32[1,128], index: 4, kind: input, shape index: {}]   ;;  %s665_s5 = inlined_call_operand.vmem [shape: f32[1,128], index: 5, kind: input, shape index: {}]   ;;  %s666_s6 = inlined_call_operand.<no memory space> [shape: f32[1], index: 6, kind: input, shape index: {}]   ;;  %s667_s7 = inlined_call_operand.hbm [shape: f32[1,8], index: 7, kind: output, shape index: {}]  }
   0x1   :  { %14 = vsyncpa [#allocation7], 0 }
   0x2   :  { %15 = vsyncpa [#allocation5], 0  ;;  %s552_s24 = smov [#allocation6]  }
   0x3   :  { %s31_s25 = sshll.u32 %s552_s24, 4  ;;  %s32_s25 = int_to_ptr.vmem [resolvable:$true] %s31_s25 }
   0x4   :  { %s474_s26 = scalar_lea.vmem %s32_s25, 1664  ;;  %p479_p1 = scmp.lt.s32.totalorder %s32_s25, %s32_s25 }
   0x5   :  { %p475_p0 = scmp.ne.s32.totalorder %s32_s25, %s474_s26  ;;  %p480_p2 = scmp.lt.s32.totalorder %s474_s26, %s474_s26 }
   0x7   :  { %p481_p3 = por %p480_p2, %p479_p1 }
   0x9   :  { %p482_p4 = pnand %p481_p3, %p475_p0 }
   0xb   :  { %485 = shalt.err (!%p482_p4)
}
   0xc   :  { %s553_s27 = smov 128   ;;  %s554_s28 = smov 8  }
   0xd   :  { %37 = dma.hbm_to_vmem [thread:$0]  %s661_s1, 1664, %s32_s25, [#allocation7], %s553_s27, %s553_s27, %s554_s28  }
   0xe   :  { %s555_s8 = smov [#allocation3]   ;;  %s556_s10 = smov [#allocation8]  }
   0xf   :  { %s22_s9 = sshll.u32 %s555_s8, 4  ;;  %s45_s11 = sshll.u32 %s556_s10, 4  ;;  %s23_s9 = int_to_ptr.vmem [resolvable:$true] %s22_s9  ;;  %s46_s11 = int_to_ptr.vmem [resolvable:$true] %s45_s11 }
  0x10   :  { %s494_s12 = scalar_lea.vmem %s23_s9, 128  ;;  %p499_p6 = scmp.lt.s32.totalorder %s23_s9, %s23_s9 }
  0x11   :  { %p495_p5 = scmp.ne.s32.totalorder %s23_s9, %s494_s12  ;;  %p500_p7 = scmp.lt.s32.totalorder %s494_s12, %s494_s12 }
  0x13   :  { %p501_p8 = por %p500_p7, %p499_p6 }
  0x15   :  { %p502_p9 = pnand %p501_p8, %p495_p5 }
  0x17   :  { %505 = shalt.err (!%p502_p9)
}
  0x18   :  { %25 = dma.hbm_to_vmem [thread:$0]  %s660_s0, 128, %s23_s9, [#allocation4]  }
  0x19   :  { %s514_s15 = scalar_lea.vmem %s46_s11, 2048  ;;  %p519_p11 = scmp.lt.s32.totalorder %s46_s11, %s46_s11 }
  0x1a   :  { %p515_p10 = scmp.ne.s32.totalorder %s46_s11, %s514_s15  ;;  %p520_p12 = scmp.lt.s32.totalorder %s514_s15, %s514_s15 }
  0x1c   :  { %p521_p13 = por %p520_p12, %p519_p11 }
  0x1e   :  { %p522_p0 = pnand %p521_p13, %p515_p10 }
  0x20   :  { %525 = shalt.err (!%p522_p0)
}
  0x21   :  { %51 = dma.hbm_to_vmem [thread:$0]  %s663_s3, 2048, %s46_s11, [#allocation7], %s553_s27, %s553_s27, %s554_s28  }
  0x22   :  { %546 = dma.done.wait [#allocation4], 128  }
  0x23   :  { %547 = vsyncadd [#allocation4], 4294967168 }
  0x24   :  { %548 = dma.done.wait [#allocation7], 3712  }
  0x25   :  { %549 = vsyncadd [#allocation7], 4294963584  ;;  %v557_v0 = vmov 0.0   ;;  %vm558_vm0 = vmmov 0   ;;  %vm92_vm1 = vcmask 1043456   ;;  %v79_v2 = vld [vmem:[#allocation6 + $0x58] sm:$0xff]  ;;  %v263_v42 = vstv %s666_s6 }
  0x26   :  { %389 = vmatprep.subr.mxu0 %v557_v0  ;;  %415 = vmatprep.mubr.msk.f32.mxu0 %vm558_vm0, %v557_v0  ;;  %v80_v1 = vld [vmem:[#allocation6 + $0x60] sm:$0xf]  ;;  %v78_v3 = vld [vmem:[#allocation6 + $0x50] sm:$0xff]  ;;  %v77_v4 = vld [vmem:[#allocation6 + $0x48] sm:$0xff]  ;;  %vm88_vm2 = vcmask 818176   ;;  %s559_s22 = smov [#allocation9]  }
  0x27   :  { %418 = vmatprep.subr.mxu1 %v557_v0  ;;  %450 = vmatprep.mubr.msk.f32.mxu1 %vm558_vm0, %v557_v0  ;;  %v182_v5 = vld [vmem:[#allocation8 + $0x78] sm:$0xff]  ;;  %v181_v6 = vld [vmem:[#allocation8 + $0x70] sm:$0xff]  ;;  %v180_v8 = vld [vmem:[#allocation8 + $0x68] sm:$0xff]  ;;  %s342_s23 = sshll.u32 %s559_s22, 4  ;;  %vm334_vm3 = vcmask 57344   ;;  %s343_s23 = int_to_ptr.vmem [resolvable:$true] %s342_s23 }
  0x28   :  { %390 = vmatpush3.msk.msra.mxu0 %vm92_vm1, %v80_v1  ;;  %419 = vmatpush3.msra.mxu1 %v182_v5  ;;  %v76_v7 = vld [vmem:[#allocation6 + $0x40] sm:$0xff]  ;;  %v75_v9 = vld [vmem:[#allocation6 + $0x38] sm:$0xff]  ;;  %v179_v10 = vld [vmem:[#allocation8 + $0x60] sm:$0xff]  ;;  %s530_s24 = scalar_lea.vmem %s343_s23, 32  ;;  %p531_p2 = scmp.lt.s32.totalorder %s343_s23, %s343_s23 }
  0x29   :  { %391 = vmatprep.subr.mxu0 %v557_v0  ;;  %420 = vmatprep.subr.mxu1 %v557_v0  ;;  %v74_v11 = vld [vmem:[#allocation6 + $0x30] sm:$0xff]  ;;  %v178_v12 = vld [vmem:[#allocation8 + $0x58] sm:$0xff]  ;;  %v73_v13 = vld [vmem:[#allocation6 + $0x28] sm:$0xff] }
  0x2a   :  { %392 = vmatpush3.msra.mxu0 %v79_v2  ;;  %421 = vmatpush3.msra.mxu1 %v181_v6  ;;  %v177_v14 = vld [vmem:[#allocation8 + $0x50] sm:$0xff]  ;;  %v72_v15 = vld [vmem:[#allocation6 + $0x20] sm:$0xff]  ;;  %v176_v16 = vld [vmem:[#allocation8 + $0x48] sm:$0xff] }
  0x2b   :  { %393 = vmatprep.subr.mxu0 %v557_v0  ;;  %422 = vmatprep.subr.mxu1 %v557_v0  ;;  %v71_v17 = vld [vmem:[#allocation6 + $0x18] sm:$0xff]  ;;  %v175_v18 = vld [vmem:[#allocation8 + $0x40] sm:$0xff]  ;;  %v70_v19 = vld [vmem:[#allocation6 + $0x10] sm:$0xff] }
  0x2c   :  { %394 = vmatpush3.msra.mxu0 %v78_v3  ;;  %423 = vmatpush3.msra.mxu1 %v180_v8  ;;  %v174_v20 = vld [vmem:[#allocation8 + $0x38] sm:$0xff]  ;;  %v69_v21 = vld [vmem:[#allocation6 + $0x8] sm:$0xff]  ;;  %v173_v22 = vld [vmem:[#allocation8 + $0x30] sm:$0xff] }
  0x2d   :  { %395 = vmatprep.subr.mxu0 %v557_v0  ;;  %424 = vmatprep.subr.mxu1 %v557_v0  ;;  %v68_v23 = vld [vmem:[#allocation6] sm:$0xff]  ;;  %v172_v24 = vld [vmem:[#allocation8 + $0x28] sm:$0xff]  ;;  %v67_v25 = vld [vmem:[#allocation3] sm:$0xff] }
  0x2e   :  { %396 = vmatpush3.msra.mxu0 %v77_v4  ;;  %425 = vmatpush3.msra.mxu1 %v179_v10  ;;  %v171_v26 = vld [vmem:[#allocation8 + $0x20] sm:$0xff]  ;;  %v170_v27 = vld [vmem:[#allocation8 + $0x18] sm:$0xff]  ;;  %v169_v28 = vld [vmem:[#allocation8 + $0x10] sm:$0xff] }
  0x2f   :  { %397 = vmatprep.subr.mxu0 %v557_v0  ;;  %426 = vmatprep.subr.mxu1 %v557_v0  ;;  %v168_v29 = vld [vmem:[#allocation8 + $0x8] sm:$0xff]  ;;  %v167_v30 = vld [vmem:[#allocation8] sm:$0xff]  ;;  %v352_v31 = vld [vmem:[%s662_s2] ss:$0 sm:$0xff] }
  0x30   :  { %398 = vmatpush3.msra.mxu0 %v76_v7  ;;  %427 = vmatpush3.msra.mxu1 %v178_v12  ;;  %v355_v36 = vld [vmem:[%s664_s4] ss:$0 sm:$0xff]  ;;  %s526_s4 = scalar_lea.vmem %s343_s23, 16 }
  0x31   :  { %399 = vmatprep.subr.mxu0 %v557_v0  ;;  %428 = vmatprep.subr.mxu1 %v557_v0  ;;  %v261_v41 = vld [vmem:[%s665_s5] sm:$0x1]  ;;  %p527_p1 = scmp.ne.s32.totalorder %s343_s23, %s526_s4  ;;  %p532_p3 = scmp.lt.s32.totalorder %s530_s24, %s526_s4 }
  0x32   :  { %400 = vmatpush3.msra.mxu0 %v75_v9  ;;  %429 = vmatpush3.msra.mxu1 %v177_v14 }
  0x33   :  { %401 = vmatprep.subr.mxu0 %v557_v0  ;;  %430 = vmatprep.subr.mxu1 %v557_v0  ;;  %p533_p4 = por %p532_p3, %p531_p2 }
  0x34   :  { %402 = vmatpush3.msra.mxu0 %v74_v11  ;;  %431 = vmatpush3.msra.mxu1 %v176_v16 }
  0x35   :  { %403 = vmatprep.subr.mxu0 %v557_v0  ;;  %432 = vmatprep.subr.mxu1 %v557_v0  ;;  %p534_p5 = pnand %p533_p4, %p527_p1 }
  0x36   :  { %404 = vmatpush3.msra.mxu0 %v73_v13  ;;  %433 = vmatpush3.msra.mxu1 %v175_v18 }
  0x37   :  { %405 = vmatprep.subr.mxu0 %v557_v0  ;;  %434 = vmatprep.subr.mxu1 %v557_v0 }
  0x38   :  { %406 = vmatpush3.msra.mxu0 %v72_v15  ;;  %435 = vmatpush3.msra.mxu1 %v174_v20 }
  0x39   :  { %407 = vmatprep.subr.mxu0 %v557_v0  ;;  %436 = vmatprep.subr.mxu1 %v557_v0 }
  0x3a   :  { %408 = vmatpush3.msra.mxu0 %v71_v17  ;;  %437 = vmatpush3.msra.mxu1 %v173_v22 }
  0x3b   :  { %409 = vmatprep.subr.mxu0 %v557_v0  ;;  %438 = vmatprep.subr.mxu1 %v557_v0 }
  0x3c   :  { %410 = vmatpush3.msra.mxu0 %v70_v19  ;;  %439 = vmatpush3.msra.mxu1 %v172_v24 }
  0x3d   :  { %411 = vmatprep.subr.mxu0 %v557_v0  ;;  %440 = vmatprep.subr.mxu1 %v557_v0 }
  0x3e   :  { %412 = vmatpush3.msra.mxu0 %v69_v21  ;;  %441 = vmatpush3.msra.mxu1 %v171_v26 }
  0x3f   :  { %413 = vmatprep.subr.mxu0 %v557_v0  ;;  %442 = vmatprep.subr.mxu1 %v557_v0 }
  0x40   :  { %414 = vmatpush3.msra.mxu0 %v68_v23  ;;  %443 = vmatpush3.msra.mxu1 %v170_v27 }
  0x41   :  { %416 = vmatmul.mubr.msk.f32.vlgmr.msra.gmra.mxu0 %vm88_vm2, %v67_v25  ;;  %453 = vmatprep.subr.mxu0 %v557_v0 }
  0x42   :  { %455 = vmatprep.mubr.msk.f32.mxu0 %vm558_vm0, %v557_v0  ;;  %444 = vmatprep.subr.mxu1 %v557_v0 }
  0x43   :  { %445 = vmatpush3.msra.mxu1 %v169_v28 }
  0x44   :  { %446 = vmatprep.subr.mxu1 %v557_v0 }
  0x45   :  { %447 = vmatpush3.msra.mxu1 %v168_v29 }
  0x46   :  { %448 = vmatprep.subr.mxu1 %v557_v0 }
  0x47   :  { %449 = vmatpush3.msra.mxu1 %v167_v30 }
 0x101   :  { %v162_v32 = vpop.f32.mrf.mxu0 }
 0x102   :  { %v163_v33 = vadd.f32 %v352_v31, %v162_v32 }
 0x103   :  { %v417_v34 = vpop.f32.mrf.mxu0 }
 0x104   :  { %v166_v35 = vmax.f32 %v163_v33, 0.0 }
 0x106   :  { %451 = vmatmul.mubr.f32.vlgmr.msra.gmra.mxu1 %v166_v35 }
 0x1c6   :  { %v256_v37 = vpop.f32.mrf.mxu1 }
 0x1c7   :  { %v257_v38 = vadd.f32 %v355_v36, %v256_v37 }
 0x1c8   :  { %v452_v39 = vpop.f32.mrf.mxu1 }
 0x1c9   :  { %v260_v40 = vmax.f32 %v257_v38, 0.0 }
 0x1cb   :  { %454 = vmatpush3.xpose.msra.mxu0 %v260_v40 }
 0x1ce   :  { %456 = vmatmul.mubr.f32.vlgmr.msra.gmra.mxu0 %v261_v41 }
 0x28e   :  { %v330_v43 = vpop.f32.mrf.mxu0 }
 0x28f   :  { %v331_v44 = vadd.f32 %v330_v43, %v263_v42 }
 0x290   :  { %v457_v45 = vpop.f32.mrf.mxu0 }
 0x291   :  { %335 = vst.msk [vmem:[#allocation9] sm:$0x1] %vm334_vm3, %v331_v44 }
 0x292   :  { %537 = shalt.err (!%p534_p5)
}
 0x293   :  { %345 = dma.vmem_to_hbm [thread:$0]  %s343_s23, 16, %s667_s7, [#allocation5]  }
 0x294   :  { %550 = dma.done.wait [#allocation5], 16  }
 0x295   :  { %551 = vsyncadd [#allocation5], 4294967280 }
 0x296   :  { %349 = vsyncpa [#allocation4], 1 }
 0x297   :  { %350 = vsyncpa [#allocation7], 1 }
 0x298   :  { %351 = vsyncpa [#allocation5], 1 }

</bundles_post_ra>
